<compile_context>
chip_gen: v5e
topology: v5e:2x2
jax: 0.10.0
libtpu: 0.0.40
codegen_flags: <defaults>
</compile_context>

<pallas_src>
import functools

import jax
import jax.numpy as jnp
import numpy as np
from jax.experimental import pallas as pl
from jax.experimental.pallas import tpu as pltpu


# ----------------------------------------------------------------------------- utils
def _round_up(x, m):
    return ((x + m - 1) // m) * m


def _vmem_budget():
    """Returns (tile-byte budget, vmem_limit_bytes or None), derived from the chip."""
    try:
        info = pltpu.get_tpu_info()
        phys = int(getattr(info, "vmem_capacity_bytes", 0) or 0)
        if phys > 0:
            # v7x: 64 MiB physical -> limit 32 MiB, budget 24 MiB live.
            # v5e/v6e: 128 MiB physical -> limit 64 MiB, budget 48 MiB live.
            limit = min(phys // 2, 64 * 1024 * 1024)
            return (limit * 3) // 4, limit
    except Exception:  # info unavailable (interpret mode / old jax) -> be conservative
        pass
    # Fallback fits under every generation's *default* scoped limit (16 MiB on v5e),
    # so vmem_limit_bytes does not need to be raised at all.
    return 12 * 1024 * 1024, None


def _pick_class_block(n_cls, per_class_bytes, budget):
    """Largest class block fitting the VMEM budget (double-buffered in+out ~= 4x
    per-class bytes); partial blocks keep the sublane (class) axis 8-aligned."""
    cap = max(1, budget // max(1, 4 * per_class_bytes))
    if cap >= n_cls:
        if n_cls >= 16:
            # >= 2 grid steps so dimension_semantics=("parallel",) can shard classes
            # across the two TensorCores of a v7x megacore (harmless elsewhere).
            return min(n_cls, _round_up(pl.cdiv(n_cls, 2), 8))
        return n_cls                      # tiny class count: one grid step (~0.35us each)
    return max(8, (min(cap, n_cls) // 8) * 8)


def _sanitize_class_block(n_cls, blk):
    blk = min(n_cls, int(blk))
    if blk < n_cls:                       # partial blocks: sublane axis must be 8-aligned
        blk = min(n_cls, max(8, (blk // 8) * 8))
    return blk


def _compiler_params(vmem_limit):
    kw = dict(dimension_semantics=("parallel",))
    if vmem_limit is not None:
        kw["vmem_limit_bytes"] = int(vmem_limit)
    return pltpu.CompilerParams(**kw)


# --------------------------------------------------------------------------- kernels
def _concat_end_kernel(prefix_ref, ctx_ref, suffix_ref, out_ref, *, shared_ctx, d, n_ctx):
    # Flattened layout: classes on sublanes, seq*D on lanes.  All three stores are
    # lane-slices at offsets 0, D, D+n_ctx*D -> unmasked vst when D % 128 == 0.
    c = out_ref.shape[0]
    ctx = ctx_ref[...]
    if shared_ctx:
        ctx = jnp.broadcast_to(ctx, (c, n_ctx * d))     # (1, n_ctx*D) -> (c, n_ctx*D)
    out_ref[:, 0:d] = prefix_ref[...]
    out_ref[:, d:d + n_ctx * d] = ctx
    out_ref[:, d + n_ctx * d:] = suffix_ref[...]


def _scatter_ctx_kernel(base_ref, prefix_ref, ctx_ref, out_ref, *, shared_ctx, d):
    # `base_ref` (HBM, aliased to the output) is never touched; every column outside
    # [0, (1+n_ctx)*D) keeps its frozen suffix value via the alias.
    del base_ref
    c = out_ref.shape[0]
    ctx = ctx_ref[...]
    if shared_ctx:
        ctx = jnp.broadcast_to(ctx, (c, ctx.shape[-1]))
    out_ref[:, 0:d] = prefix_ref[...]
    out_ref[:, d:] = ctx


# -------------------------------------------------------------------------- wrappers
def prompt_concat_end(prefix, ctx, suffix, *, class_block=None):
    """prompts = concat([prefix, ctx, suffix], axis=1) (class_token_position == 'end').

    prefix: (n_cls, 1, D); suffix: (n_cls, S-1-n_ctx, D);
    ctx: (n_ctx, D) shared or (n_cls, n_ctx, D) class-specific (cast to prefix dtype).
    """
    n_cls, one, d = prefix.shape
    assert one == 1, "token_prefix must hold exactly the SOS token"
    shared_ctx = (ctx.ndim == 2)
    n_ctx = ctx.shape[0] if shared_ctx else ctx.shape[1]
    s_suf = suffix.shape[1]
    s = 1 + n_ctx + s_suf
    out_dtype = prefix.dtype
    itemsize = jnp.dtype(out_dtype).itemsize

    # Pre-cast the learned ctx once (halves its DMA bytes for bf16/fp16 embeddings)
    # and flatten everything to (classes, seq*D): free bitcasts for contiguous arrays.
    ctx = ctx.astype(out_dtype)
    prefix_f = prefix.reshape(n_cls, d)
    suffix_f = suffix.reshape(n_cls, s_suf * d)
    ctx_f = ctx.reshape(1, n_ctx * d) if shared_ctx else ctx.reshape(n_cls, n_ctx * d)

    per_class = (1 + s_suf + s + (0 if shared_ctx else n_ctx)) * d * itemsize
    budget, vmem_limit = _vmem_budget()
    c_blk = (_sanitize_class_block(n_cls, class_block) if class_block is not None
             else _pick_class_block(n_cls, per_class, budget))

    if shared_ctx:
        # Constant block index -> shared ctx stays resident in VMEM across grid steps.
        ctx_spec = pl.BlockSpec((1, n_ctx * d), lambda i: (0, 0))
    else:
        ctx_spec = pl.BlockSpec((c_blk, n_ctx * d), lambda i: (i, 0))

    bytes_accessed = (prefix.size + ctx.size + suffix.size + n_cls * s * d) * itemsize

    out_flat = pl.pallas_call(
        functools.partial(_concat_end_kernel, shared_ctx=shared_ctx, d=d, n_ctx=n_ctx),
        out_shape=jax.ShapeDtypeStruct((n_cls, s * d), out_dtype),
        grid=(pl.cdiv(n_cls, c_blk),),
        in_specs=[
            pl.BlockSpec((c_blk, d), lambda i: (i, 0)),             # prefix
            ctx_spec,                                               # ctx
            pl.BlockSpec((c_blk, s_suf * d), lambda i: (i, 0)),     # suffix
        ],
        out_specs=pl.BlockSpec((c_blk, s * d), lambda i: (i, 0)),
        compiler_params=_compiler_params(vmem_limit),
        cost_estimate=pl.CostEstimate(flops=0, transcendentals=0,
                                      bytes_accessed=int(bytes_accessed)),
    )(prefix_f, ctx_f, suffix_f)
    return out_flat.reshape(n_cls, s, d)


def make_base_prompts(prefix, suffix, n_ctx):
    """Pre-assemble the frozen part of the prompts once; rows [1, 1+n_ctx) are a
    placeholder that the scatter path always overwrites."""
    n_cls, _, d = prefix.shape
    hole = jnp.zeros((n_cls, int(n_ctx), d), prefix.dtype)
    return jnp.concatenate([prefix, hole, suffix], axis=1)


def prompt_scatter_ctx(base_prompts, prefix, ctx, *, class_block=None):
    """Fast path: rewrite only the prefix+ctx columns of a pre-assembled prompts
    buffer; the frozen suffix columns ride along via input_output_aliases
    (~S/(1+n_ctx), ~4.5x for CLIP shapes, less HBM write traffic).

    For the alias to be honoured without a protective full copy, the caller must
    donate `base_prompts` (e.g. jax.jit(prompt_scatter_ctx, donate_argnums=(0,)))
    and thread the returned prompts as the next call's base.  Correctness never
    depends on donation.  Falls back to prompt_concat_end when D % 128 != 0.
    """
    n_cls, s, d = base_prompts.shape
    shared_ctx = (ctx.ndim == 2)
    n_ctx = ctx.shape[0] if shared_ctx else ctx.shape[1]
    out_dtype = base_prompts.dtype
    if d % 128 != 0:
        # Lane-aligned column window needs D % 128 == 0; auto-fallback to concat.
        suffix = base_prompts[:, 1 + n_ctx:, :]
        return prompt_concat_end(prefix, ctx, suffix, class_block=class_block)

    itemsize = jnp.dtype(out_dtype).itemsize
    w_cols = (1 + n_ctx) * d                           # lane-aligned rewrite window

    ctx = ctx.astype(out_dtype)
    prefix_f = prefix.reshape(n_cls, d)
    ctx_f = ctx.reshape(1, n_ctx * d) if shared_ctx else ctx.reshape(n_cls, n_ctx * d)
    base_f = base_prompts.reshape(n_cls, s * d)

    per_class = (d + w_cols + (0 if shared_ctx else n_ctx * d)) * itemsize
    budget, vmem_limit = _vmem_budget()
    c_blk = (_sanitize_class_block(n_cls, class_block) if class_block is not None
             else _pick_class_block(n_cls, per_class, budget))

    if shared_ctx:
        ctx_spec = pl.BlockSpec((1, n_ctx * d), lambda i: (0, 0))   # resident in VMEM
    else:
        ctx_spec = pl.BlockSpec((c_blk, n_ctx * d), lambda i: (i, 0))

    bytes_accessed = (prefix.size + ctx.size + n_cls * w_cols) * itemsize

    out_flat = pl.pallas_call(
        functools.partial(_scatter_ctx_kernel, shared_ctx=shared_ctx, d=d),
        out_shape=jax.ShapeDtypeStruct((n_cls, s * d), out_dtype),
        grid=(pl.cdiv(n_cls, c_blk),),
        in_specs=[
            pl.BlockSpec(memory_space=pl.ANY),                      # aliased base, no DMA
            pl.BlockSpec((c_blk, d), lambda i: (i, 0)),             # prefix
            ctx_spec,                                               # ctx
        ],
        # Output blocks cover only the first (1+n_ctx)*D columns of each class; the
        # remaining frozen-suffix columns are carried by the alias, never re-read or
        # re-written.
        out_specs=pl.BlockSpec((c_blk, w_cols), lambda i: (i, 0)),
        input_output_aliases={0: 0},
        compiler_params=_compiler_params(vmem_limit),
        cost_estimate=pl.CostEstimate(flops=0, transcendentals=0,
                                      bytes_accessed=int(bytes_accessed)),
    )(base_f, prefix_f, ctx_f)
    return out_flat.reshape(n_cls, s, d)


class PromptLearnerPallas:
    """JAX/Pallas port of PromptLearner.forward for class_token_position == 'end'.

    token_prefix: (n_cls, 1, D) frozen SOS embeddings per class.
    token_suffix: (n_cls, S-1-n_ctx, D) frozen class-name + EOS embeddings.
    __call__(ctx) with ctx = (n_ctx, D) shared or (n_cls, n_ctx, D) class-specific
    learned context returns the assembled (n_cls, S, D) prompts.

    Default path = concat kernel.  The scatter fast path (prompt_scatter_ctx) needs
    the caller to donate + thread the base buffer, so it is exposed as a standalone
    function rather than hidden behind a class attribute (a live attribute cannot be
    donated, which would force XLA to insert a full protective copy per call).
    """

    def __init__(self, token_prefix, token_suffix, n_ctx, class_block=None):
        self.token_prefix = token_prefix
        self.token_suffix = token_suffix
        self.n_ctx = int(n_ctx)
        self.class_block = class_block

    def __call__(self, ctx):
        return prompt_concat_end(self.token_prefix, ctx, self.token_suffix,
                                 class_block=self.class_block)


# TODO(synk): class_token_position in {'middle', 'front'} needs per-class ragged
# splits of suffix by name_lens; doable with PrefetchScalarGridSpec scalar prefetch
# of name_lens, omitted here ('end' is the default CoOp configuration).


def _reference_prompts(prefix, ctx, suffix):
    if ctx.ndim == 2:
        ctx = jnp.broadcast_to(ctx[None, :, :], (prefix.shape[0],) + ctx.shape)
    return jnp.concatenate([prefix, ctx.astype(prefix.dtype), suffix], axis=1)


if __name__ == "__main__":
    key = jax.random.PRNGKey(0)
    # Small CLIP-like shapes: 12 classes, 16 context tokens, 77-token prompts, D=128.
    n_cls, n_ctx, seq_len, ctx_dim = 12, 16, 77, 128
    n_suffix = seq_len - 1 - n_ctx
    emb_dtype = jnp.float32

    k1, k2, k3, k4 = jax.random.split(key, 4)
    token_prefix = jax.random.normal(k1, (n_cls, 1, ctx_dim), emb_dtype)
    token_suffix = jax.random.normal(k2, (n_cls, n_suffix, ctx_dim), emb_dtype)
    ctx_shared = 0.02 * jax.random.normal(k3, (n_ctx, ctx_dim), jnp.float32)
    ctx_csc = 0.02 * jax.random.normal(k4, (n_cls, n_ctx, ctx_dim), jnp.float32)

    ref_shared = _reference_prompts(token_prefix, ctx_shared, token_suffix)
    ref_csc = _reference_prompts(token_prefix, ctx_csc, token_suffix)

    # 1) Default path: flattened-lane concat kernel (shared + class-specific ctx),
    #    auto class-block (single grid step at this size).
    learner = PromptLearnerPallas(token_prefix, token_suffix, n_ctx)
    out = jax.block_until_ready(learner(ctx_shared))
    np.testing.assert_allclose(np.asarray(out), np.asarray(ref_shared), rtol=0, atol=0)
    out = jax.block_until_ready(learner(ctx_csc))
    np.testing.assert_allclose(np.asarray(out), np.asarray(ref_csc), rtol=0, atol=0)

    # 2) Scatter fast path: donate + thread the pre-assembled base buffer so the
    #    input/output alias is honoured with no protective copy.
    scatter = jax.jit(prompt_scatter_ctx, donate_argnums=(0,))
    base = make_base_prompts(token_prefix, token_suffix, n_ctx)
    out1 = jax.block_until_ready(scatter(base, token_prefix, ctx_shared))
    np.testing.assert_allclose(np.asarray(out1), np.asarray(ref_shared), rtol=0, atol=0)
    out2 = jax.block_until_ready(scatter(out1, token_prefix, ctx_csc))  # thread base
    np.testing.assert_allclose(np.asarray(out2), np.asarray(ref_csc), rtol=0, atol=0)

    print("KERNEL_OK")
</pallas_src>

<mosaic_0001>
module attributes {stable_mosaic.version = 11 : i64} {
  func.func @_concat_end_kernel(%arg0: i32, %arg1: memref<12x128xf32, #tpu.memory_space<vmem>>, %arg2: memref<1x2048xf32, #tpu.memory_space<vmem>>, %arg3: memref<12x7680xf32, #tpu.memory_space<vmem>>, %arg4: memref<12x9856xf32, #tpu.memory_space<vmem>>) attributes {dimension_semantics = [#tpu.dimension_semantics<parallel>], iteration_bounds = array<i64: 1>, scalar_prefetch = 0 : i64, scratch_operands = 0 : i64, tpu.core_type = #tpu.core_type<tc>, window_params = [{transform_indices = @transform_0, window_bounds = array<i64: 12, 128>}, {pipeline_mode = #tpu.pipeline_mode<synchronous>, transform_indices = @transform_1, window_bounds = array<i64: 1, 2048>}, {transform_indices = @transform_2, window_bounds = array<i64: 12, 7680>}, {transform_indices = @transform_3, window_bounds = array<i64: 12, 9856>}]} {
    %c0 = arith.constant 0 : index
    %c0_0 = arith.constant 0 : index
    %0 = vector.load %arg2[%c0, %c0_0] : memref<1x2048xf32, #tpu.memory_space<vmem>>, vector<1x2048xf32>
    %1 = vector.shape_cast %0 : vector<1x2048xf32> to vector<1x2048xf32>
    %2 = vector.broadcast %1 : vector<1x2048xf32> to vector<12x2048xf32>
    %c0_1 = arith.constant 0 : index
    %c0_2 = arith.constant 0 : index
    %3 = vector.load %arg1[%c0_1, %c0_2] : memref<12x128xf32, #tpu.memory_space<vmem>>, vector<12x128xf32>
    %c0_3 = arith.constant 0 : index
    %c0_4 = arith.constant 0 : index
    %4 = vector.load %arg4[%c0_3, %c0_4] : memref<12x9856xf32, #tpu.memory_space<vmem>>, vector<12x128xf32>
    tpu.vector_store %arg4[%c0_3, %c0_4], %3 {strides = array<i32>} : memref<12x9856xf32, #tpu.memory_space<vmem>>, vector<12x128xf32>,
    %c0_5 = arith.constant 0 : index
    %c128 = arith.constant 128 : index
    %5 = vector.load %arg4[%c0_5, %c128] : memref<12x9856xf32, #tpu.memory_space<vmem>>, vector<12x2048xf32>
    tpu.vector_store %arg4[%c0_5, %c128], %2 {strides = array<i32>} : memref<12x9856xf32, #tpu.memory_space<vmem>>, vector<12x2048xf32>,
    %c0_6 = arith.constant 0 : index
    %c0_7 = arith.constant 0 : index
    %6 = vector.load %arg3[%c0_6, %c0_7] : memref<12x7680xf32, #tpu.memory_space<vmem>>, vector<12x7680xf32>
    %c0_8 = arith.constant 0 : index
    %c2176 = arith.constant 2176 : index
    %7 = vector.load %arg4[%c0_8, %c2176] : memref<12x9856xf32, #tpu.memory_space<vmem>>, vector<12x7680xf32>
    tpu.vector_store %arg4[%c0_8, %c2176], %6 {strides = array<i32>} : memref<12x9856xf32, #tpu.memory_space<vmem>>, vector<12x7680xf32>,
    return
  }
  func.func @transform_0(%arg0: i32) -> (i32, i32) {
    %c0_i32 = arith.constant 0 : i32
    %c0_i32_0 = arith.constant 0 : i32
    return %arg0, %c0_i32 : i32, i32
  }
  func.func @transform_1(%arg0: i32) -> (i32, i32) {
    %c0_i32 = arith.constant 0 : i32
    %c0_i32_0 = arith.constant 0 : i32
    %c0_i32_1 = arith.constant 0 : i32
    return %c0_i32, %c0_i32_0 : i32, i32
  }
  func.func @transform_2(%arg0: i32) -> (i32, i32) {
    %c0_i32 = arith.constant 0 : i32
    %c0_i32_0 = arith.constant 0 : i32
    return %arg0, %c0_i32 : i32, i32
  }
  func.func @transform_3(%arg0: i32) -> (i32, i32) {
    %c0_i32 = arith.constant 0 : i32
    %c0_i32_0 = arith.constant 0 : i32
    return %arg0, %c0_i32 : i32, i32
  }
}

</mosaic_0001>

<bundles_post_ra>
// kernel: tpu_custom_call.1
= control target key start
LH: loop header
LB: loop body
LE: loop exit
PB: predicated region body
PF: predicated region fallthrough
CT: control target
= control target key end

     0   :  { %8 = vsyncpa [#allocation3], 0  ;;  %s546_s0 = inlined_call_operand.hbm [shape: f32[12,128], index: 0, kind: input, shape index: {}]   ;;  %s547_s1 = inlined_call_operand.hbm [shape: f32[1,2048], index: 1, kind: input, shape index: {}]   ;;  %s548_s2 = inlined_call_operand.hbm [shape: f32[12,7680], index: 2, kind: input, shape index: {}]   ;;  %s549_s3 = inlined_call_operand.hbm [shape: f32[12,9856], index: 3, kind: output, shape index: {}]  }
   0x1   :  { %9 = vsyncpa [#allocation6], 0  ;;  %s29_s14 = sshll.u32 %s547_s1, 4  ;;  %s30_s14 = int_to_ptr.hbm [resolvable:$true] %s29_s14 }
   0x2   :  { %10 = vsyncpa [#allocation4], 0  ;;  %s504_s15 = smov [#allocation5]   ;;  %s15_s19 = sshll.u32 %s546_s0, 4  ;;  %s16_s19 = int_to_ptr.hbm [resolvable:$true] %s15_s19 }
   0x3   :  { %s31_s16 = sshll.u32 %s504_s15, 4  ;;  %s505_s20 = smov [#allocation2]   ;;  %s32_s16 = int_to_ptr.vmem [resolvable:$true] %s31_s16 }
   0x4   :  { %34 = dma.hbm_to_vmem [thread:$0]  %s30_s14, 256, %s32_s16, [#allocation6]  }
   0x5   :  { %s17_s21 = sshll.u32 %s505_s20, 4  ;;  %s506_s22 = smov 128   ;;  %s18_s21 = int_to_ptr.vmem [resolvable:$true] %s17_s21 }
   0x6   :  { %s507_s23 = smov 8   ;;  %s39_s1 = sshll.u32 %s548_s2, 4  ;;  %s40_s1 = int_to_ptr.hbm [resolvable:$true] %s39_s1 }
   0x7   :  { %23 = dma.hbm_to_vmem [thread:$0]  %s16_s19, 256, %s18_s21, [#allocation3], %s506_s22, %s506_s22, %s507_s23  }
   0x8   :  { %s508_s26 = smov [#allocation7]   ;;  %s509_s28 = smov 7680  }
   0x9   :  { %s41_s27 = sshll.u32 %s508_s26, 4  ;;  %s510_s29 = smov 480   ;;  %s42_s27 = int_to_ptr.vmem [resolvable:$true] %s41_s27 }
   0xa   :  { %47 = dma.hbm_to_vmem [thread:$0]  %s40_s1, 15360, %s42_s27, [#allocation6], %s509_s28, %s509_s28, %s510_s29  }
   0xb   :  { %498 = dma.done.wait [#allocation3], 256  }
   0xc   :  { %499 = vsyncadd [#allocation3], 4294967040 }
   0xd   :  { %500 = dma.done.wait [#allocation6], 15616  }
   0xe   :  { %501 = vsyncadd [#allocation6], 4294951680  ;;  %v96_v0 = vld [vmem:[#allocation2] sm:$0xff]  ;;  %v97_v1 = vld [vmem:[#allocation2 + $0x8] sm:$0xf]  ;;  %s511_s0 = smov [#allocation8]  }
   0xf   :  { %v60_v2 = vld [vmem:[#allocation5] sm:$0xff]  ;;  %98 = vst [vmem:[#allocation8] sm:$0xff] %v96_v0  ;;  %v61_v10 = vld [vmem:[#allocation5 + $0x8] sm:$0xff]  ;;  %v132_v20 = vld [vmem:[#allocation7] sm:$0xff]  ;;  %s376_s2 = sshll.u32 %s511_s0, 4  ;;  %s378_s5 = sshll.u32 %s549_s3, 4  ;;  %s377_s2 = int_to_ptr.vmem [resolvable:$true] %s376_s2  ;;  %s379_s5 = int_to_ptr.hbm [resolvable:$true] %s378_s5 }
  0x10   :  { %v64_v3 = vperm.slane %v60_v2, 0  ;;  %v65_v4 = vperm.slane %v60_v2, 1  ;;  %99 = vst [vmem:[#allocation8 + $0x268] sm:$0xf] %v97_v1  ;;  %v66_v5 = vperm.slane %v60_v2, 2  ;;  %v67_v6 = vperm.slane %v60_v2, 3 }
  0x11   :  { %v68_v7 = vperm.slane %v60_v2, 4  ;;  %v69_v8 = vperm.slane %v60_v2, 5  ;;  %v70_v9 = vperm.slane %v60_v2, 6  ;;  %v71_v11 = vperm.slane %v60_v2, 7  ;;  %v133_v21 = vld [vmem:[#allocation7 + $0x8] sm:$0xff]  ;;  %v134_v22 = vld [vmem:[#allocation7 + $0x10] sm:$0xff] }
  0x12   :  { %100 = vst [vmem:[#allocation8 + $0x8] sm:$0xff] %v64_v3  ;;  %v72_v12 = vperm.slane %v61_v10, 0  ;;  %v73_v13 = vperm.slane %v61_v10, 1  ;;  %v74_v14 = vperm.slane %v61_v10, 2  ;;  %v75_v15 = vperm.slane %v61_v10, 3  ;;  %v135_v23 = vld [vmem:[#allocation7 + $0x18] sm:$0xff] }
  0x13   :  { %116 = vst [vmem:[#allocation8 + $0x270] sm:$0xf] %v64_v3  ;;  %v76_v16 = vperm.slane %v61_v10, 4  ;;  %v77_v17 = vperm.slane %v61_v10, 5  ;;  %v78_v18 = vperm.slane %v61_v10, 6  ;;  %v79_v19 = vperm.slane %v61_v10, 7 }
  0x14   :  { %101 = vst [vmem:[#allocation8 + $0x10] sm:$0xff] %v65_v4  ;;  %v136_v24 = vld [vmem:[#allocation7 + $0x20] sm:$0xff]  ;;  %v137_v25 = vld [vmem:[#allocation7 + $0x28] sm:$0xff]  ;;  %v138_v26 = vld [vmem:[#allocation7 + $0x30] sm:$0xff]  ;;  %s512_s6 = smov 9856   ;;  %s513_s7 = smov 616  }
  0x15   :  { %117 = vst [vmem:[#allocation8 + $0x278] sm:$0xf] %v65_v4  ;;  %v139_v27 = vld [vmem:[#allocation7 + $0x38] sm:$0xff]  ;;  %v140_v28 = vld [vmem:[#allocation7 + $0x40] sm:$0xff]  ;;  %v141_v29 = vld [vmem:[#allocation7 + $0x48] sm:$0xff] }
  0x16   :  { %102 = vst [vmem:[#allocation8 + $0x18] sm:$0xff] %v66_v5  ;;  %v142_v30 = vld [vmem:[#allocation7 + $0x50] sm:$0xff]  ;;  %v143_v31 = vld [vmem:[#allocation7 + $0x58] sm:$0xff]  ;;  %v144_v32 = vld [vmem:[#allocation7 + $0x60] sm:$0xff] }
  0x17   :  { %118 = vst [vmem:[#allocation8 + $0x280] sm:$0xf] %v66_v5  ;;  %v145_v33 = vld [vmem:[#allocation7 + $0x68] sm:$0xff]  ;;  %v146_v34 = vld [vmem:[#allocation7 + $0x70] sm:$0xff]  ;;  %v147_v35 = vld [vmem:[#allocation7 + $0x78] sm:$0xff] }
  0x18   :  { %103 = vst [vmem:[#allocation8 + $0x20] sm:$0xff] %v67_v6  ;;  %v148_v36 = vld [vmem:[#allocation7 + $0x80] sm:$0xff]  ;;  %v149_v37 = vld [vmem:[#allocation7 + $0x88] sm:$0xff]  ;;  %v150_v38 = vld [vmem:[#allocation7 + $0x90] sm:$0xff] }
  0x19   :  { %119 = vst [vmem:[#allocation8 + $0x288] sm:$0xf] %v67_v6  ;;  %v151_v39 = vld [vmem:[#allocation7 + $0x98] sm:$0xff]  ;;  %v152_v40 = vld [vmem:[#allocation7 + $0xa0] sm:$0xff]  ;;  %v153_v41 = vld [vmem:[#allocation7 + $0xa8] sm:$0xff] }
  0x1a   :  { %104 = vst [vmem:[#allocation8 + $0x28] sm:$0xff] %v68_v7  ;;  %v154_v42 = vld [vmem:[#allocation7 + $0xb0] sm:$0xff]  ;;  %v155_v43 = vld [vmem:[#allocation7 + $0xb8] sm:$0xff]  ;;  %v156_v44 = vld [vmem:[#allocation7 + $0xc0] sm:$0xff] }
  0x1b   :  { %120 = vst [vmem:[#allocation8 + $0x290] sm:$0xf] %v68_v7  ;;  %v157_v45 = vld [vmem:[#allocation7 + $0xc8] sm:$0xff]  ;;  %v158_v46 = vld [vmem:[#allocation7 + $0xd0] sm:$0xff]  ;;  %v159_v47 = vld [vmem:[#allocation7 + $0xd8] sm:$0xff] }
  0x1c   :  { %105 = vst [vmem:[#allocation8 + $0x30] sm:$0xff] %v69_v8  ;;  %v160_v48 = vld [vmem:[#allocation7 + $0xe0] sm:$0xff]  ;;  %v161_v49 = vld [vmem:[#allocation7 + $0xe8] sm:$0xff]  ;;  %v162_v50 = vld [vmem:[#allocation7 + $0xf0] sm:$0xff] }
  0x1d   :  { %121 = vst [vmem:[#allocation8 + $0x298] sm:$0xf] %v69_v8  ;;  %v163_v51 = vld [vmem:[#allocation7 + $0xf8] sm:$0xff]  ;;  %v164_v52 = vld [vmem:[#allocation7 + $0x100] sm:$0xff]  ;;  %v165_v53 = vld [vmem:[#allocation7 + $0x108] sm:$0xff] }
  0x1e   :  { %106 = vst [vmem:[#allocation8 + $0x38] sm:$0xff] %v70_v9  ;;  %v166_v54 = vld [vmem:[#allocation7 + $0x110] sm:$0xff]  ;;  %v167_v55 = vld [vmem:[#allocation7 + $0x118] sm:$0xff]  ;;  %v168_v56 = vld [vmem:[#allocation7 + $0x120] sm:$0xff] }
  0x1f   :  { %122 = vst [vmem:[#allocation8 + $0x2a0] sm:$0xf] %v70_v9  ;;  %v169_v57 = vld [vmem:[#allocation7 + $0x128] sm:$0xff]  ;;  %v170_v58 = vld [vmem:[#allocation7 + $0x130] sm:$0xff]  ;;  %v171_v59 = vld [vmem:[#allocation7 + $0x138] sm:$0xff] }
  0x20   :  { %107 = vst [vmem:[#allocation8 + $0x40] sm:$0xff] %v71_v11  ;;  %v172_v60 = vld [vmem:[#allocation7 + $0x140] sm:$0xff]  ;;  %v173_v61 = vld [vmem:[#allocation7 + $0x148] sm:$0xff]  ;;  %v174_v62 = vld [vmem:[#allocation7 + $0x150] sm:$0xff] }
  0x21   :  { %123 = vst [vmem:[#allocation8 + $0x2a8] sm:$0xf] %v71_v11  ;;  %v175_v63 = vld [vmem:[#allocation7 + $0x158] sm:$0xff]  ;;  %v176_v0 = vld [vmem:[#allocation7 + $0x160] sm:$0xff]  ;;  %v177_v1 = vld [vmem:[#allocation7 + $0x168] sm:$0xff] }
  0x22   :  { %108 = vst [vmem:[#allocation8 + $0x48] sm:$0xff] %v72_v12  ;;  %v178_v2 = vld [vmem:[#allocation7 + $0x170] sm:$0xff]  ;;  %v179_v3 = vld [vmem:[#allocation7 + $0x178] sm:$0xff]  ;;  %v180_v4 = vld [vmem:[#allocation7 + $0x180] sm:$0xff] }
  0x23   :  { %124 = vst [vmem:[#allocation8 + $0x2b0] sm:$0xf] %v72_v12  ;;  %v181_v5 = vld [vmem:[#allocation7 + $0x188] sm:$0xff]  ;;  %v182_v6 = vld [vmem:[#allocation7 + $0x190] sm:$0xff]  ;;  %v183_v7 = vld [vmem:[#allocation7 + $0x198] sm:$0xff] }
  0x24   :  { %109 = vst [vmem:[#allocation8 + $0x50] sm:$0xff] %v73_v13  ;;  %v184_v8 = vld [vmem:[#allocation7 + $0x1a0] sm:$0xff]  ;;  %v185_v9 = vld [vmem:[#allocation7 + $0x1a8] sm:$0xff]  ;;  %v186_v10 = vld [vmem:[#allocation7 + $0x1b0] sm:$0xff] }
  0x25   :  { %125 = vst [vmem:[#allocation8 + $0x2b8] sm:$0xf] %v73_v13  ;;  %v187_v11 = vld [vmem:[#allocation7 + $0x1b8] sm:$0xff]  ;;  %v188_v12 = vld [vmem:[#allocation7 + $0x1c0] sm:$0xff]  ;;  %v189_v13 = vld [vmem:[#allocation7 + $0x1c8] sm:$0xff] }
  0x26   :  { %110 = vst [vmem:[#allocation8 + $0x58] sm:$0xff] %v74_v14 }
  0x27   :  { %126 = vst [vmem:[#allocation8 + $0x2c0] sm:$0xf] %v74_v14  ;;  %v190_v14 = vld [vmem:[#allocation7 + $0x1d0] sm:$0xff] }
  0x28   :  { %111 = vst [vmem:[#allocation8 + $0x60] sm:$0xff] %v75_v15 }
  0x29   :  { %127 = vst [vmem:[#allocation8 + $0x2c8] sm:$0xf] %v75_v15  ;;  %v191_v15 = vld [vmem:[#allocation7 + $0x1d8] sm:$0xff] }
  0x2a   :  { %112 = vst [vmem:[#allocation8 + $0x68] sm:$0xff] %v76_v16 }
  0x2b   :  { %128 = vst [vmem:[#allocation8 + $0x2d0] sm:$0xf] %v76_v16  ;;  %v192_v16 = vld [vmem:[#allocation7 + $0x1e0] sm:$0xf] }
  0x2c   :  { %113 = vst [vmem:[#allocation8 + $0x70] sm:$0xff] %v77_v17 }
  0x2d   :  { %129 = vst [vmem:[#allocation8 + $0x2d8] sm:$0xf] %v77_v17  ;;  %v193_v17 = vld [vmem:[#allocation7 + $0x1e8] sm:$0xf] }
  0x2e   :  { %114 = vst [vmem:[#allocation8 + $0x78] sm:$0xff] %v78_v18 }
  0x2f   :  { %130 = vst [vmem:[#allocation8 + $0x2e0] sm:$0xf] %v78_v18  ;;  %v194_v18 = vld [vmem:[#allocation7 + $0x1f0] sm:$0xf] }
  0x30   :  { %115 = vst [vmem:[#allocation8 + $0x80] sm:$0xff] %v79_v19 }
  0x31   :  { %131 = vst [vmem:[#allocation8 + $0x2e8] sm:$0xf] %v79_v19  ;;  %v195_v19 = vld [vmem:[#allocation7 + $0x1f8] sm:$0xf] }
  0x32   :  { %252 = vst [vmem:[#allocation8 + $0x88] sm:$0xff] %v132_v20  ;;  %v196_v20 = vld [vmem:[#allocation7 + $0x200] sm:$0xf] }
  0x33   :  { %253 = vst [vmem:[#allocation8 + $0x90] sm:$0xff] %v133_v21  ;;  %v197_v21 = vld [vmem:[#allocation7 + $0x208] sm:$0xf] }
  0x34   :  { %254 = vst [vmem:[#allocation8 + $0x98] sm:$0xff] %v134_v22  ;;  %v198_v22 = vld [vmem:[#allocation7 + $0x210] sm:$0xf] }
  0x35   :  { %255 = vst [vmem:[#allocation8 + $0xa0] sm:$0xff] %v135_v23  ;;  %v199_v23 = vld [vmem:[#allocation7 + $0x218] sm:$0xf] }
  0x36   :  { %256 = vst [vmem:[#allocation8 + $0xa8] sm:$0xff] %v136_v24  ;;  %v200_v24 = vld [vmem:[#allocation7 + $0x220] sm:$0xf] }
  0x37   :  { %257 = vst [vmem:[#allocation8 + $0xb0] sm:$0xff] %v137_v25  ;;  %v201_v25 = vld [vmem:[#allocation7 + $0x228] sm:$0xf] }
  0x38   :  { %258 = vst [vmem:[#allocation8 + $0xb8] sm:$0xff] %v138_v26  ;;  %v202_v26 = vld [vmem:[#allocation7 + $0x230] sm:$0xf] }
  0x39   :  { %259 = vst [vmem:[#allocation8 + $0xc0] sm:$0xff] %v139_v27  ;;  %v203_v27 = vld [vmem:[#allocation7 + $0x238] sm:$0xf] }
  0x3a   :  { %260 = vst [vmem:[#allocation8 + $0xc8] sm:$0xff] %v140_v28  ;;  %v204_v28 = vld [vmem:[#allocation7 + $0x240] sm:$0xf] }
  0x3b   :  { %261 = vst [vmem:[#allocation8 + $0xd0] sm:$0xff] %v141_v29  ;;  %v205_v29 = vld [vmem:[#allocation7 + $0x248] sm:$0xf] }
  0x3c   :  { %262 = vst [vmem:[#allocation8 + $0xd8] sm:$0xff] %v142_v30  ;;  %v206_v30 = vld [vmem:[#allocation7 + $0x250] sm:$0xf] }
  0x3d   :  { %263 = vst [vmem:[#allocation8 + $0xe0] sm:$0xff] %v143_v31  ;;  %v207_v31 = vld [vmem:[#allocation7 + $0x258] sm:$0xf] }
  0x3e   :  { %264 = vst [vmem:[#allocation8 + $0xe8] sm:$0xff] %v144_v32  ;;  %v208_v32 = vld [vmem:[#allocation7 + $0x260] sm:$0xf] }
  0x3f   :  { %265 = vst [vmem:[#allocation8 + $0xf0] sm:$0xff] %v145_v33  ;;  %v209_v33 = vld [vmem:[#allocation7 + $0x268] sm:$0xf] }
  0x40   :  { %266 = vst [vmem:[#allocation8 + $0xf8] sm:$0xff] %v146_v34  ;;  %v210_v34 = vld [vmem:[#allocation7 + $0x270] sm:$0xf] }
  0x41   :  { %267 = vst [vmem:[#allocation8 + $0x100] sm:$0xff] %v147_v35  ;;  %v211_v35 = vld [vmem:[#allocation7 + $0x278] sm:$0xf] }
  0x42   :  { %268 = vst [vmem:[#allocation8 + $0x108] sm:$0xff] %v148_v36  ;;  %v212_v36 = vld [vmem:[#allocation7 + $0x280] sm:$0xf] }
  0x43   :  { %269 = vst [vmem:[#allocation8 + $0x110] sm:$0xff] %v149_v37  ;;  %v213_v37 = vld [vmem:[#allocation7 + $0x288] sm:$0xf] }
  0x44   :  { %270 = vst [vmem:[#allocation8 + $0x118] sm:$0xff] %v150_v38  ;;  %v214_v38 = vld [vmem:[#allocation7 + $0x290] sm:$0xf] }
  0x45   :  { %271 = vst [vmem:[#allocation8 + $0x120] sm:$0xff] %v151_v39  ;;  %v215_v39 = vld [vmem:[#allocation7 + $0x298] sm:$0xf] }
  0x46   :  { %272 = vst [vmem:[#allocation8 + $0x128] sm:$0xff] %v152_v40  ;;  %v216_v40 = vld [vmem:[#allocation7 + $0x2a0] sm:$0xf] }
  0x47   :  { %273 = vst [vmem:[#allocation8 + $0x130] sm:$0xff] %v153_v41  ;;  %v217_v41 = vld [vmem:[#allocation7 + $0x2a8] sm:$0xf] }
  0x48   :  { %274 = vst [vmem:[#allocation8 + $0x138] sm:$0xff] %v154_v42  ;;  %v218_v42 = vld [vmem:[#allocation7 + $0x2b0] sm:$0xf] }
  0x49   :  { %275 = vst [vmem:[#allocation8 + $0x140] sm:$0xff] %v155_v43  ;;  %v219_v43 = vld [vmem:[#allocation7 + $0x2b8] sm:$0xf] }
  0x4a   :  { %276 = vst [vmem:[#allocation8 + $0x148] sm:$0xff] %v156_v44  ;;  %v220_v44 = vld [vmem:[#allocation7 + $0x2c0] sm:$0xf] }
  0x4b   :  { %277 = vst [vmem:[#allocation8 + $0x150] sm:$0xff] %v157_v45  ;;  %v221_v45 = vld [vmem:[#allocation7 + $0x2c8] sm:$0xf] }
  0x4c   :  { %278 = vst [vmem:[#allocation8 + $0x158] sm:$0xff] %v158_v46  ;;  %v222_v46 = vld [vmem:[#allocation7 + $0x2d0] sm:$0xf] }
  0x4d   :  { %279 = vst [vmem:[#allocation8 + $0x160] sm:$0xff] %v159_v47  ;;  %v223_v47 = vld [vmem:[#allocation7 + $0x2d8] sm:$0xf] }
  0x4e   :  { %280 = vst [vmem:[#allocation8 + $0x168] sm:$0xff] %v160_v48  ;;  %v224_v48 = vld [vmem:[#allocation7 + $0x2e0] sm:$0xf] }
  0x4f   :  { %281 = vst [vmem:[#allocation8 + $0x170] sm:$0xff] %v161_v49  ;;  %v225_v49 = vld [vmem:[#allocation7 + $0x2e8] sm:$0xf] }
  0x50   :  { %282 = vst [vmem:[#allocation8 + $0x178] sm:$0xff] %v162_v50  ;;  %v226_v50 = vld [vmem:[#allocation7 + $0x2f0] sm:$0xf] }
  0x51   :  { %283 = vst [vmem:[#allocation8 + $0x180] sm:$0xff] %v163_v51  ;;  %v227_v51 = vld [vmem:[#allocation7 + $0x2f8] sm:$0xf] }
  0x52   :  { %284 = vst [vmem:[#allocation8 + $0x188] sm:$0xff] %v164_v52  ;;  %v228_v52 = vld [vmem:[#allocation7 + $0x300] sm:$0xf] }
  0x53   :  { %285 = vst [vmem:[#allocation8 + $0x190] sm:$0xff] %v165_v53  ;;  %v229_v53 = vld [vmem:[#allocation7 + $0x308] sm:$0xf] }
  0x54   :  { %286 = vst [vmem:[#allocation8 + $0x198] sm:$0xff] %v166_v54  ;;  %v230_v54 = vld [vmem:[#allocation7 + $0x310] sm:$0xf] }
  0x55   :  { %287 = vst [vmem:[#allocation8 + $0x1a0] sm:$0xff] %v167_v55  ;;  %v231_v55 = vld [vmem:[#allocation7 + $0x318] sm:$0xf] }
  0x56   :  { %288 = vst [vmem:[#allocation8 + $0x1a8] sm:$0xff] %v168_v56  ;;  %v232_v56 = vld [vmem:[#allocation7 + $0x320] sm:$0xf] }
  0x57   :  { %289 = vst [vmem:[#allocation8 + $0x1b0] sm:$0xff] %v169_v57  ;;  %v233_v57 = vld [vmem:[#allocation7 + $0x328] sm:$0xf] }
  0x58   :  { %290 = vst [vmem:[#allocation8 + $0x1b8] sm:$0xff] %v170_v58  ;;  %v234_v58 = vld [vmem:[#allocation7 + $0x330] sm:$0xf] }
  0x59   :  { %291 = vst [vmem:[#allocation8 + $0x1c0] sm:$0xff] %v171_v59  ;;  %v235_v59 = vld [vmem:[#allocation7 + $0x338] sm:$0xf] }
  0x5a   :  { %292 = vst [vmem:[#allocation8 + $0x1c8] sm:$0xff] %v172_v60  ;;  %v236_v60 = vld [vmem:[#allocation7 + $0x340] sm:$0xf] }
  0x5b   :  { %293 = vst [vmem:[#allocation8 + $0x1d0] sm:$0xff] %v173_v61  ;;  %v237_v61 = vld [vmem:[#allocation7 + $0x348] sm:$0xf] }
  0x5c   :  { %294 = vst [vmem:[#allocation8 + $0x1d8] sm:$0xff] %v174_v62  ;;  %v238_v62 = vld [vmem:[#allocation7 + $0x350] sm:$0xf] }
  0x5d   :  { %295 = vst [vmem:[#allocation8 + $0x1e0] sm:$0xff] %v175_v63  ;;  %v239_v63 = vld [vmem:[#allocation7 + $0x358] sm:$0xf] }
  0x5e   :  { %296 = vst [vmem:[#allocation8 + $0x1e8] sm:$0xff] %v176_v0  ;;  %v240_v0 = vld [vmem:[#allocation7 + $0x360] sm:$0xf] }
  0x5f   :  { %297 = vst [vmem:[#allocation8 + $0x1f0] sm:$0xff] %v177_v1  ;;  %v241_v1 = vld [vmem:[#allocation7 + $0x368] sm:$0xf] }
  0x60   :  { %298 = vst [vmem:[#allocation8 + $0x1f8] sm:$0xff] %v178_v2  ;;  %v242_v2 = vld [vmem:[#allocation7 + $0x370] sm:$0xf] }
  0x61   :  { %299 = vst [vmem:[#allocation8 + $0x200] sm:$0xff] %v179_v3  ;;  %v243_v3 = vld [vmem:[#allocation7 + $0x378] sm:$0xf] }
  0x62   :  { %300 = vst [vmem:[#allocation8 + $0x208] sm:$0xff] %v180_v4  ;;  %v244_v4 = vld [vmem:[#allocation7 + $0x380] sm:$0xf] }
  0x63   :  { %301 = vst [vmem:[#allocation8 + $0x210] sm:$0xff] %v181_v5  ;;  %v245_v5 = vld [vmem:[#allocation7 + $0x388] sm:$0xf] }
  0x64   :  { %302 = vst [vmem:[#allocation8 + $0x218] sm:$0xff] %v182_v6  ;;  %v246_v6 = vld [vmem:[#allocation7 + $0x390] sm:$0xf] }
  0x65   :  { %303 = vst [vmem:[#allocation8 + $0x220] sm:$0xff] %v183_v7  ;;  %v247_v7 = vld [vmem:[#allocation7 + $0x398] sm:$0xf] }
  0x66   :  { %304 = vst [vmem:[#allocation8 + $0x228] sm:$0xff] %v184_v8  ;;  %v248_v8 = vld [vmem:[#allocation7 + $0x3a0] sm:$0xf] }
  0x67   :  { %305 = vst [vmem:[#allocation8 + $0x230] sm:$0xff] %v185_v9  ;;  %v249_v9 = vld [vmem:[#allocation7 + $0x3a8] sm:$0xf] }
  0x68   :  { %306 = vst [vmem:[#allocation8 + $0x238] sm:$0xff] %v186_v10  ;;  %v250_v10 = vld [vmem:[#allocation7 + $0x3b0] sm:$0xf] }
  0x69   :  { %307 = vst [vmem:[#allocation8 + $0x240] sm:$0xff] %v187_v11  ;;  %v251_v11 = vld [vmem:[#allocation7 + $0x3b8] sm:$0xf] }
  0x6a   :  { %308 = vst [vmem:[#allocation8 + $0x248] sm:$0xff] %v188_v12 }
  0x6b   :  { %309 = vst [vmem:[#allocation8 + $0x250] sm:$0xff] %v189_v13 }
  0x6c   :  { %310 = vst [vmem:[#allocation8 + $0x258] sm:$0xff] %v190_v14 }
  0x6d   :  { %311 = vst [vmem:[#allocation8 + $0x260] sm:$0xff] %v191_v15 }
  0x6e   :  { %312 = vst [vmem:[#allocation8 + $0x2f0] sm:$0xf] %v192_v16 }
  0x6f   :  { %313 = vst [vmem:[#allocation8 + $0x2f8] sm:$0xf] %v193_v17 }
  0x70   :  { %314 = vst [vmem:[#allocation8 + $0x300] sm:$0xf] %v194_v18 }
  0x71   :  { %315 = vst [vmem:[#allocation8 + $0x308] sm:$0xf] %v195_v19 }
  0x72   :  { %316 = vst [vmem:[#allocation8 + $0x310] sm:$0xf] %v196_v20 }
  0x73   :  { %317 = vst [vmem:[#allocation8 + $0x318] sm:$0xf] %v197_v21 }
  0x74   :  { %318 = vst [vmem:[#allocation8 + $0x320] sm:$0xf] %v198_v22 }
  0x75   :  { %319 = vst [vmem:[#allocation8 + $0x328] sm:$0xf] %v199_v23 }
  0x76   :  { %320 = vst [vmem:[#allocation8 + $0x330] sm:$0xf] %v200_v24 }
  0x77   :  { %321 = vst [vmem:[#allocation8 + $0x338] sm:$0xf] %v201_v25 }
  0x78   :  { %322 = vst [vmem:[#allocation8 + $0x340] sm:$0xf] %v202_v26 }
  0x79   :  { %323 = vst [vmem:[#allocation8 + $0x348] sm:$0xf] %v203_v27 }
  0x7a   :  { %324 = vst [vmem:[#allocation8 + $0x350] sm:$0xf] %v204_v28 }
  0x7b   :  { %325 = vst [vmem:[#allocation8 + $0x358] sm:$0xf] %v205_v29 }
  0x7c   :  { %326 = vst [vmem:[#allocation8 + $0x360] sm:$0xf] %v206_v30 }
  0x7d   :  { %327 = vst [vmem:[#allocation8 + $0x368] sm:$0xf] %v207_v31 }
  0x7e   :  { %328 = vst [vmem:[#allocation8 + $0x370] sm:$0xf] %v208_v32 }
  0x7f   :  { %329 = vst [vmem:[#allocation8 + $0x378] sm:$0xf] %v209_v33 }
  0x80   :  { %330 = vst [vmem:[#allocation8 + $0x380] sm:$0xf] %v210_v34 }
  0x81   :  { %331 = vst [vmem:[#allocation8 + $0x388] sm:$0xf] %v211_v35 }
  0x82   :  { %332 = vst [vmem:[#allocation8 + $0x390] sm:$0xf] %v212_v36 }
  0x83   :  { %333 = vst [vmem:[#allocation8 + $0x398] sm:$0xf] %v213_v37 }
  0x84   :  { %334 = vst [vmem:[#allocation8 + $0x3a0] sm:$0xf] %v214_v38 }
  0x85   :  { %335 = vst [vmem:[#allocation8 + $0x3a8] sm:$0xf] %v215_v39 }
  0x86   :  { %336 = vst [vmem:[#allocation8 + $0x3b0] sm:$0xf] %v216_v40 }
  0x87   :  { %337 = vst [vmem:[#allocation8 + $0x3b8] sm:$0xf] %v217_v41 }
  0x88   :  { %338 = vst [vmem:[#allocation8 + $0x3c0] sm:$0xf] %v218_v42 }
  0x89   :  { %339 = vst [vmem:[#allocation8 + $0x3c8] sm:$0xf] %v219_v43 }
  0x8a   :  { %340 = vst [vmem:[#allocation8 + $0x3d0] sm:$0xf] %v220_v44 }
  0x8b   :  { %341 = vst [vmem:[#allocation8 + $0x3d8] sm:$0xf] %v221_v45 }
  0x8c   :  { %342 = vst [vmem:[#allocation8 + $0x3e0] sm:$0xf] %v222_v46 }
  0x8d   :  { %343 = vst [vmem:[#allocation8 + $0x3e8] sm:$0xf] %v223_v47 }
  0x8e   :  { %344 = vst [vmem:[#allocation8 + $0x3f0] sm:$0xf] %v224_v48 }
  0x8f   :  { %345 = vst [vmem:[#allocation8 + $0x3f8] sm:$0xf] %v225_v49 }
  0x90   :  { %346 = vst [vmem:[#allocation8 + $0x400] sm:$0xf] %v226_v50 }
  0x91   :  { %347 = vst [vmem:[#allocation8 + $0x408] sm:$0xf] %v227_v51 }
  0x92   :  { %348 = vst [vmem:[#allocation8 + $0x410] sm:$0xf] %v228_v52 }
  0x93   :  { %349 = vst [vmem:[#allocation8 + $0x418] sm:$0xf] %v229_v53 }
  0x94   :  { %350 = vst [vmem:[#allocation8 + $0x420] sm:$0xf] %v230_v54 }
  0x95   :  { %351 = vst [vmem:[#allocation8 + $0x428] sm:$0xf] %v231_v55 }
  0x96   :  { %352 = vst [vmem:[#allocation8 + $0x430] sm:$0xf] %v232_v56 }
  0x97   :  { %353 = vst [vmem:[#allocation8 + $0x438] sm:$0xf] %v233_v57 }
  0x98   :  { %354 = vst [vmem:[#allocation8 + $0x440] sm:$0xf] %v234_v58 }
  0x99   :  { %355 = vst [vmem:[#allocation8 + $0x448] sm:$0xf] %v235_v59 }
  0x9a   :  { %356 = vst [vmem:[#allocation8 + $0x450] sm:$0xf] %v236_v60 }
  0x9b   :  { %357 = vst [vmem:[#allocation8 + $0x458] sm:$0xf] %v237_v61 }
  0x9c   :  { %358 = vst [vmem:[#allocation8 + $0x460] sm:$0xf] %v238_v62 }
  0x9d   :  { %359 = vst [vmem:[#allocation8 + $0x468] sm:$0xf] %v239_v63 }
  0x9e   :  { %360 = vst [vmem:[#allocation8 + $0x470] sm:$0xf] %v240_v0 }
  0x9f   :  { %361 = vst [vmem:[#allocation8 + $0x478] sm:$0xf] %v241_v1 }
  0xa0   :  { %362 = vst [vmem:[#allocation8 + $0x480] sm:$0xf] %v242_v2 }
  0xa1   :  { %363 = vst [vmem:[#allocation8 + $0x488] sm:$0xf] %v243_v3 }
  0xa2   :  { %364 = vst [vmem:[#allocation8 + $0x490] sm:$0xf] %v244_v4 }
  0xa3   :  { %365 = vst [vmem:[#allocation8 + $0x498] sm:$0xf] %v245_v5 }
  0xa4   :  { %366 = vst [vmem:[#allocation8 + $0x4a0] sm:$0xf] %v246_v6 }
  0xa5   :  { %367 = vst [vmem:[#allocation8 + $0x4a8] sm:$0xf] %v247_v7 }
  0xa6   :  { %368 = vst [vmem:[#allocation8 + $0x4b0] sm:$0xf] %v248_v8 }
  0xa7   :  { %369 = vst [vmem:[#allocation8 + $0x4b8] sm:$0xf] %v249_v9 }
  0xa8   :  { %370 = vst [vmem:[#allocation8 + $0x4c0] sm:$0xf] %v250_v10 }
  0xa9   :  { %371 = vst [vmem:[#allocation8 + $0x4c8] sm:$0xf] %v251_v11 }
  0xaa   :  { %384 = dma.vmem_to_hbm [thread:$0]  %s377_s2, 19712, %s379_s5, [#allocation4], %s512_s6, %s512_s6, %s513_s7  }
  0xab   :  { %502 = dma.done.wait [#allocation4], 19712  }
  0xac   :  { %503 = vsyncadd [#allocation4], 4294947584 }
  0xad   :  { %389 = vsyncpa [#allocation3], 1 }
  0xae   :  { %390 = vsyncpa [#allocation6], 1 }
  0xaf   :  { %391 = vsyncpa [#allocation4], 1 }

</bundles_post_ra>
